<compile_context>
chip_gen: v7x
topology: tpu7x:2x2x1
jax: 0.10.0
libtpu: 0.0.40
codegen_flags: <defaults>
</compile_context>

<pallas_src>
import jax
import jax.numpy as jnp
from jax.experimental import pallas as pl
from jax.experimental.pallas import tpu as pltpu


def bahdanau_decoder_kernel(
    ids_ref,        # SMEM (T,) int32 : token ids (scalar prefetch; gather done via emb BlockSpec)
    emb_ref,        # (1, 1, H) bf16  : gathered embedding row for step t
    enc_ref,        # (S, H)    bf16  : encoder_outputs (batch squeezed), VMEM-resident
    h0_ref,         # (1, H)    f32   : last_hidden[-1]
    wa_h_ref,       # (H, H)    bf16  : concat-attn weight, hidden half (pre-T)
    wa_e_ref,       # (H, H)    bf16  : concat-attn weight, encoder half (pre-T)
    ba_ref,         # (1, H)    f32
    v_ref,          # (1, H)    f32   : Attn.v
    w_ih_ref,       # (2, H, 3H) bf16 : GRU input weights [word, context], gates (r,z,n) on lanes
    b_ih_ref,       # (1, 3H)   f32
    w_hh_ref,       # (H, 3H)   bf16  : GRU hidden weights, gates fused on lanes
    b_hh_ref,       # (1, 3H)   f32
    wout_ref,       # (2, H, V) bf16  : output proj split [gru_out, context] (pre-T)
    bout_ref,       # (1, V)    f32
    logp_ref,       # out (1, 1, V) f32 : per-step log-probs
    hfin_ref,       # out (1, H)    f32 : final hidden state
    attn_ref,       # out (1, 1, S) f32 : per-step attention weights (lane-dense)
    h_scr,          # VMEM (1, H) f32 : hidden state carried across the T grid steps
    ebase_scr,      # VMEM (S, H) f32 : enc @ Wa_e + b_a (step-invariant attention term)
):
    del ids_ref  # gather handled by the emb BlockSpec index_map
    S, H = enc_ref.shape
    f32 = jnp.float32
    bf16 = jnp.bfloat16
    t = pl.program_id(0)

    @pl.when(t == 0)
    def _init():
        h_scr[...] = h0_ref[...]
        # step-invariant half of the concat-attention energy, computed once per call
        ebase_scr[...] = (
            jnp.dot(enc_ref[...], wa_e_ref[...], preferred_element_type=f32)
            + ba_ref[...]
        )

    h = h_scr[...]                                        # (1, H) f32
    we = emb_ref[0]                                       # (1, H) bf16 (dropout = eval identity)

    # ---- 'concat' attention: score_i = v . (Wa_h h + Wa_e e_i + b_a) ----
    # TODO(synk): reference's hidden[:, b] indexing / mismatched 2-D cat cannot execute in
    # PyTorch; kernel implements the intended concat-attention over the full hidden vector,
    # and (matching the reference) applies no tanh before the v-dot.
    h_wa = jnp.dot(h.astype(bf16), wa_h_ref[...], preferred_element_type=f32)   # (1, H)
    energy = ebase_scr[...] + h_wa                                               # (S, H) f32
    # TODO(synk): at large S, pre-transpose enc/energy in the wrapper so this is a plain
    # (1,H)@(H,S) MXU matmul instead of a transposed contraction.
    scores = jnp.einsum("ih,sh->is", v_ref[...], energy,
                        preferred_element_type=f32)                              # (1, S)

    # softmax over the sequence axis (exact divide: attn is externally visible)
    m = jnp.max(scores, axis=1, keepdims=True)
    ex = jnp.exp(scores - m)
    attn = ex / jnp.sum(ex, axis=1, keepdims=True)        # (1, S) f32
    attn_ref[0] = attn

    # ---- context = attn_weights.bmm(encoder_outputs)  (MXU contraction) ----
    context = jnp.dot(attn.astype(bf16), enc_ref[...], preferred_element_type=f32)   # (1, H) f32

    # ---- GRU cell (single layer, single step) on [word_embedded ; context] ----
    # TODO(synk): reference declares nn.GRU(hidden_size, hidden_size) but feeds a 2*hidden
    # input; kernel uses input size 2H so the math is well defined.
    gi = (jnp.dot(we, w_ih_ref[0], preferred_element_type=f32)
          + jnp.dot(context.astype(bf16), w_ih_ref[1], preferred_element_type=f32)
          + b_ih_ref[...])                                                        # (1, 3H) f32
    gh = (jnp.dot(h.astype(bf16), w_hh_ref[...], preferred_element_type=f32)
          + b_hh_ref[...])                                                        # (1, 3H) f32

    r = jax.nn.sigmoid(gi[:, 0:H] + gh[:, 0:H])
    z = jax.nn.sigmoid(gi[:, H:2 * H] + gh[:, H:2 * H])
    n = jnp.tanh(gi[:, 2 * H:3 * H] + r * gh[:, 2 * H:3 * H])
    h_new = (1.0 - z) * n + z * h                                                 # (1, H) f32
    h_scr[...] = h_new
    hfin_ref[...] = h_new

    # ---- output projection on [gru_output ; context] + log_softmax ----
    # TODO(synk): reference declares nn.Linear(hidden_size, output_size) but feeds a
    # 2*hidden concat; kernel uses a (2H -> V) projection.
    logits = (jnp.dot(h_new.astype(bf16), wout_ref[0], preferred_element_type=f32)
              + jnp.dot(context.astype(bf16), wout_ref[1], preferred_element_type=f32)
              + bout_ref[...])                                                    # (1, V) f32
    lm = jnp.max(logits, axis=1, keepdims=True)
    lse = lm + jnp.log(jnp.sum(jnp.exp(logits - lm), axis=1, keepdims=True))
    logp_ref[0] = logits - lse


def bahdanau_attn_decoder(word_input, last_hidden, encoder_outputs, params):
    """Wrapper (glue): reshapes + one fused pallas_call over T decode steps.

    word_input may be a scalar/(1,) token id (the module's forward, T=1) or a (T,) sequence
    of teacher-forced token ids.  Returns (log_probs (T,V), hidden (1,1,H), attn (T,1,S)).
    """
    n_layers, B, H = last_hidden.shape
    S = encoder_outputs.shape[0]
    V = params["bout"].shape[-1]
    V_emb = params["emb"].shape[0]
    assert B == 1 and n_layers == 1  # implied by the reference forward

    ids = jnp.asarray(word_input, dtype=jnp.int32).reshape(-1)
    T = ids.shape[0]
    ids = jnp.clip(ids, 0, V_emb - 1)          # guard the gather index (no OOB DMA)

    enc = encoder_outputs.reshape(S, H).astype(jnp.bfloat16)
    h0 = last_hidden[-1].reshape(1, H).astype(jnp.float32)
    emb3 = params["emb"].reshape(V_emb, 1, H)  # (V, 1, H): gathered block per step is (1, 1, H)

    def resident(shape):
        zeros = (0,) * len(shape)

        def idx(t, ids_ref):              # constant index map -> DMA once, VMEM-resident
            return zeros

        return pl.BlockSpec(shape, idx)

    grid_spec = pltpu.PrefetchScalarGridSpec(
        num_scalar_prefetch=1,
        grid=(T,),
        in_specs=[
            # embedding row gather driven by the prefetched token ids
            pl.BlockSpec((1, 1, H), lambda t, ids_ref: (ids_ref[t], 0, 0)),
            resident((S, H)),              # enc
            resident((1, H)),              # h0
            resident((H, H)),              # wa_h
            resident((H, H)),              # wa_e
            resident((1, H)),              # ba
            resident((1, H)),              # v
            resident((2, H, 3 * H)),       # w_ih
            resident((1, 3 * H)),          # b_ih
            resident((H, 3 * H)),          # w_hh
            resident((1, 3 * H)),          # b_hh
            resident((2, H, V)),           # wout
            resident((1, V)),              # bout
        ],
        out_specs=(
            pl.BlockSpec((1, 1, V), lambda t, ids_ref: (t, 0, 0)),   # per-step log-probs
            pl.BlockSpec((1, H), lambda t, ids_ref: (0, 0)),         # final hidden (resident)
            pl.BlockSpec((1, 1, S), lambda t, ids_ref: (t, 0, 0)),   # per-step attn weights
        ),
        scratch_shapes=[
            pltpu.VMEM((1, H), jnp.float32),   # carried hidden state
            pltpu.VMEM((S, H), jnp.float32),   # step-invariant attention term
        ],
    )

    logp, h_fin, attn = pl.pallas_call(
        bahdanau_decoder_kernel,
        out_shape=(
            jax.ShapeDtypeStruct((T, 1, V), jnp.float32),
            jax.ShapeDtypeStruct((1, H), jnp.float32),
            jax.ShapeDtypeStruct((T, 1, S), jnp.float32),
        ),
        grid_spec=grid_spec,
        compiler_params=pltpu.CompilerParams(
            dimension_semantics=("arbitrary",),        # serial recurrence over T
            vmem_limit_bytes=32 * 1024 * 1024,          # room for resident weights; fits v7x's 64 MiB
        ),
    )(ids, emb3, enc, h0,
      params["wa_h"], params["wa_e"], params["ba"], params["v"],
      params["w_ih"], params["b_ih"], params["w_hh"], params["b_hh"],
      params["wout"], params["bout"])

    output = logp.reshape(T, V)                     # (T, V) log-probabilities; T=1 -> (1, V)
    hidden = h_fin.reshape(n_layers, B, H)          # (1, 1, H)
    attn_weights = attn.reshape(T, B, S)            # (T, 1, S); T=1 -> (1, 1, S)
    return output, hidden, attn_weights


def init_params(key, hidden_size, output_size):
    H, V = hidden_size, output_size
    keys = jax.random.split(key, 11)
    bf16, f32 = jnp.bfloat16, jnp.float32

    def uniform(k, shape, fan_in, dtype):
        bound = 1.0 / float(fan_in) ** 0.5
        return jax.random.uniform(k, shape, f32, -bound, bound).astype(dtype)

    return {
        "emb":  jax.random.normal(keys[0], (V, H), f32).astype(bf16),   # nn.Embedding(V, H)
        "wa_h": uniform(keys[1], (H, H), 2 * H, bf16),   # attn Linear(2H,H) weight, hidden half (T)
        "wa_e": uniform(keys[2], (H, H), 2 * H, bf16),   # attn Linear(2H,H) weight, encoder half (T)
        "ba":   uniform(keys[3], (1, H), 2 * H, f32),
        "v":    jax.random.normal(keys[4], (1, H), f32) * 0.1,          # Attn.v
        "w_ih": uniform(keys[5], (2, H, 3 * H), H, bf16),               # GRU weight_ih, gates fused
        "b_ih": uniform(keys[6], (1, 3 * H), H, f32),
        "w_hh": uniform(keys[7], (H, 3 * H), H, bf16),                  # GRU weight_hh, gates fused
        "b_hh": uniform(keys[8], (1, 3 * H), H, f32),
        "wout": uniform(keys[9], (2, H, V), 2 * H, bf16),               # out Linear weight (split+T)
        "bout": uniform(keys[10], (1, V), 2 * H, f32),
    }


if __name__ == "__main__":
    hidden_size = 32
    output_size = 16
    seq_len = 8
    n_layers = 1

    root = jax.random.PRNGKey(0)
    kp, kh, ke = jax.random.split(root, 3)
    params = init_params(kp, hidden_size, output_size)

    last_hidden = jax.random.normal(kh, (n_layers, 1, hidden_size), jnp.float32)
    encoder_outputs = jax.random.normal(ke, (seq_len, 1, hidden_size), jnp.float32)

    fn = jax.jit(bahdanau_attn_decoder)

    # --- module-faithful single step (T = 1), matches BahdanauAttnDecoderRNN.forward ---
    word_input = jnp.array([3], dtype=jnp.int32)
    output, hidden, attn_weights = fn(word_input, last_hidden, encoder_outputs, params)
    jax.block_until_ready((output, hidden, attn_weights))

    assert output.shape == (1, output_size)
    assert hidden.shape == (n_layers, 1, hidden_size)
    assert attn_weights.shape == (1, 1, seq_len)
    assert jnp.abs(jnp.sum(attn_weights) - 1.0) < 1e-3            # exact softmax normalization
    assert jnp.abs(jnp.sum(jnp.exp(output)) - 1.0) < 1e-3         # log-probs normalize
    assert bool(jnp.all(jnp.isfinite(output))) and bool(jnp.all(jnp.isfinite(hidden)))

    # --- fused multi-step decode (T = 4, teacher-forced), weights stay VMEM-resident ---
    token_seq = jnp.array([3, 7, 1, 5], dtype=jnp.int32)
    out_seq, hid_seq, attn_seq = fn(token_seq, last_hidden, encoder_outputs, params)
    jax.block_until_ready((out_seq, hid_seq, attn_seq))

    assert out_seq.shape == (4, output_size)
    assert hid_seq.shape == (n_layers, 1, hidden_size)
    assert attn_seq.shape == (4, 1, seq_len)
    assert bool(jnp.all(jnp.abs(jnp.sum(attn_seq, axis=-1) - 1.0) < 1e-3))
    assert bool(jnp.all(jnp.abs(jnp.sum(jnp.exp(out_seq), axis=-1) - 1.0) < 1e-3))
    assert bool(jnp.all(jnp.isfinite(out_seq))) and bool(jnp.all(jnp.isfinite(hid_seq)))
    # step 0 of the fused decode must equal the single-step forward
    assert bool(jnp.max(jnp.abs(out_seq[0] - output[0])) < 1e-4)

    print("KERNEL_OK")
</pallas_src>

<mosaic_0001>
module attributes {stable_mosaic.version = 11 : i64} {
  func.func @bahdanau_decoder_kernel(%arg0: i32, %arg1: memref<1xi32, #tpu.memory_space<smem>>, %arg2: memref<1x1x32xbf16, #tpu.memory_space<vmem>>, %arg3: memref<8x32xbf16, #tpu.memory_space<vmem>>, %arg4: memref<1x32xf32, #tpu.memory_space<vmem>>, %arg5: memref<32x32xbf16, #tpu.memory_space<vmem>>, %arg6: memref<32x32xbf16, #tpu.memory_space<vmem>>, %arg7: memref<1x32xf32, #tpu.memory_space<vmem>>, %arg8: memref<1x32xf32, #tpu.memory_space<vmem>>, %arg9: memref<2x32x96xbf16, #tpu.memory_space<vmem>>, %arg10: memref<1x96xf32, #tpu.memory_space<vmem>>, %arg11: memref<32x96xbf16, #tpu.memory_space<vmem>>, %arg12: memref<1x96xf32, #tpu.memory_space<vmem>>, %arg13: memref<2x32x16xbf16, #tpu.memory_space<vmem>>, %arg14: memref<1x16xf32, #tpu.memory_space<vmem>>, %arg15: memref<1x1x16xf32, #tpu.memory_space<vmem>>, %arg16: memref<1x32xf32, #tpu.memory_space<vmem>>, %arg17: memref<1x1x8xf32, #tpu.memory_space<vmem>>, %arg18: memref<1x32xf32, #tpu.memory_space<vmem>>, %arg19: memref<8x32xf32, #tpu.memory_space<vmem>>) attributes {dimension_semantics = [#tpu.dimension_semantics<arbitrary>], iteration_bounds = array<i64: 1>, scalar_prefetch = 1 : i64, scratch_operands = 2 : i64, tpu.core_type = #tpu.core_type<tc>, window_params = [{transform_indices = @transform_0, window_bounds = array<i64: 1, 1, 32>}, {pipeline_mode = #tpu.pipeline_mode<synchronous>, transform_indices = @transform_1, window_bounds = array<i64: 8, 32>}, {pipeline_mode = #tpu.pipeline_mode<synchronous>, transform_indices = @transform_2, window_bounds = array<i64: 1, 32>}, {pipeline_mode = #tpu.pipeline_mode<synchronous>, transform_indices = @transform_3, window_bounds = array<i64: 32, 32>}, {pipeline_mode = #tpu.pipeline_mode<synchronous>, transform_indices = @transform_4, window_bounds = array<i64: 32, 32>}, {pipeline_mode = #tpu.pipeline_mode<synchronous>, transform_indices = @transform_5, window_bounds = array<i64: 1, 32>}, {pipeline_mode = #tpu.pipeline_mode<synchronous>, transform_indices = @transform_6, window_bounds = array<i64: 1, 32>}, {pipeline_mode = #tpu.pipeline_mode<synchronous>, transform_indices = @transform_7, window_bounds = array<i64: 2, 32, 96>}, {pipeline_mode = #tpu.pipeline_mode<synchronous>, transform_indices = @transform_8, window_bounds = array<i64: 1, 96>}, {pipeline_mode = #tpu.pipeline_mode<synchronous>, transform_indices = @transform_9, window_bounds = array<i64: 32, 96>}, {pipeline_mode = #tpu.pipeline_mode<synchronous>, transform_indices = @transform_10, window_bounds = array<i64: 1, 96>}, {pipeline_mode = #tpu.pipeline_mode<synchronous>, transform_indices = @transform_11, window_bounds = array<i64: 2, 32, 16>}, {pipeline_mode = #tpu.pipeline_mode<synchronous>, transform_indices = @transform_12, window_bounds = array<i64: 1, 16>}, {transform_indices = @transform_13, window_bounds = array<i64: 1, 1, 16>}, {pipeline_mode = #tpu.pipeline_mode<synchronous>, transform_indices = @transform_14, window_bounds = array<i64: 1, 32>}, {transform_indices = @transform_15, window_bounds = array<i64: 1, 1, 8>}]} {
    %c0_i32 = arith.constant 0 : i32
    %0 = arith.cmpi eq, %arg0, %c0_i32 : i32
    %1 = arith.extui %0 : i1 to i32
    %c0_i32_0 = arith.constant 0 : i32
    %2 = arith.cmpi ne, %1, %c0_i32_0 : i32
    scf.if %2 {
      %c0_56 = arith.constant 0 : index
      %c0_57 = arith.constant 0 : index
      %97 = vector.load %arg4[%c0_56, %c0_57] : memref<1x32xf32, #tpu.memory_space<vmem>>, vector<1x32xf32>
      %c0_58 = arith.constant 0 : index
      %c0_59 = arith.constant 0 : index
      %98 = vector.load %arg18[%c0_58, %c0_59] : memref<1x32xf32, #tpu.memory_space<vmem>>, vector<1x32xf32>
      tpu.vector_store %arg18[%c0_58, %c0_59], %97 {strides = array<i32>} : memref<1x32xf32, #tpu.memory_space<vmem>>, vector<1x32xf32>,
      %c0_60 = arith.constant 0 : index
      %c0_61 = arith.constant 0 : index
      %99 = vector.load %arg3[%c0_60, %c0_61] : memref<8x32xbf16, #tpu.memory_space<vmem>>, vector<8x32xbf16>
      %c0_62 = arith.constant 0 : index
      %c0_63 = arith.constant 0 : index
      %100 = vector.load %arg6[%c0_62, %c0_63] : memref<32x32xbf16, #tpu.memory_space<vmem>>, vector<32x32xbf16>
      %cst_64 = arith.constant dense<0.000000e+00> : vector<8x32xf32>
      %101 = tpu.matmul %99, %100, %cst_64 {dimension_numbers = #tpu.dot_dimension_numbers<[1], [0], [0], [1], [0, 0, 1, 1], [], []>} : vector<8x32xbf16>, vector<32x32xbf16>, vector<8x32xf32> -> vector<8x32xf32>
      %c0_65 = arith.constant 0 : index
      %c0_66 = arith.constant 0 : index
      %102 = vector.load %arg7[%c0_65, %c0_66] : memref<1x32xf32, #tpu.memory_space<vmem>>, vector<1x32xf32>
      %103 = vector.broadcast %102 : vector<1x32xf32> to vector<8x32xf32>
      %104 = arith.addf %101, %103 : vector<8x32xf32>
      %c0_67 = arith.constant 0 : index
      %c0_68 = arith.constant 0 : index
      %105 = vector.load %arg19[%c0_67, %c0_68] : memref<8x32xf32, #tpu.memory_space<vmem>>, vector<8x32xf32>
      tpu.vector_store %arg19[%c0_67, %c0_68], %104 {strides = array<i32>} : memref<8x32xf32, #tpu.memory_space<vmem>>, vector<8x32xf32>,
    } else {
    }
    %c0 = arith.constant 0 : index
    %c0_1 = arith.constant 0 : index
    %3 = vector.load %arg18[%c0, %c0_1] : memref<1x32xf32, #tpu.memory_space<vmem>>, vector<1x32xf32>
    %c0_2 = arith.constant 0 : index
    %c0_3 = arith.constant 0 : index
    %c0_4 = arith.constant 0 : index
    %4 = vector.load %arg2[%c0_2, %c0_3, %c0_4] : memref<1x1x32xbf16, #tpu.memory_space<vmem>>, vector<1x1x32xbf16>
    %5 = vector.shape_cast %4 : vector<1x1x32xbf16> to vector<1x32xbf16>
    %6 = arith.truncf %3 : vector<1x32xf32> to vector<1x32xbf16>
    %c0_5 = arith.constant 0 : index
    %c0_6 = arith.constant 0 : index
    %7 = vector.load %arg5[%c0_5, %c0_6] : memref<32x32xbf16, #tpu.memory_space<vmem>>, vector<32x32xbf16>
    %cst = arith.constant dense<0.000000e+00> : vector<1x32xf32>
    %8 = tpu.matmul %6, %7, %cst {dimension_numbers = #tpu.dot_dimension_numbers<[1], [0], [0], [1], [0, 0, 1, 1], [], []>} : vector<1x32xbf16>, vector<32x32xbf16>, vector<1x32xf32> -> vector<1x32xf32>
    %c0_7 = arith.constant 0 : index
    %c0_8 = arith.constant 0 : index
    %9 = vector.load %arg19[%c0_7, %c0_8] : memref<8x32xf32, #tpu.memory_space<vmem>>, vector<8x32xf32>
    %10 = vector.broadcast %8 : vector<1x32xf32> to vector<8x32xf32>
    %11 = arith.addf %9, %10 : vector<8x32xf32>
    %c0_9 = arith.constant 0 : index
    %c0_10 = arith.constant 0 : index
    %12 = vector.load %arg8[%c0_9, %c0_10] : memref<1x32xf32, #tpu.memory_space<vmem>>, vector<1x32xf32>
    "tpu.trace_start"() <{level = 10 : i32, message = "ih,sh->is"}> : () -> ()
    %cst_11 = arith.constant dense<0.000000e+00> : vector<1x8xf32>
    %13 = tpu.matmul %12, %11, %cst_11 {dimension_numbers = #tpu.dot_dimension_numbers<[1], [1], [0], [0], [0, 0, 1, 0], [], []>} : vector<1x32xf32>, vector<8x32xf32>, vector<1x8xf32> -> vector<1x8xf32>
    "tpu.trace_stop"() : () -> ()
    %cst_12 = arith.constant dense<0xFF800000> : vector<1xf32>
    %14 = vector.multi_reduction <maximumf>, %13, %cst_12 [1] : vector<1x8xf32> to vector<1xf32>
    %15 = vector.shape_cast %14 : vector<1xf32> to vector<1x1xf32>
    %16 = vector.broadcast %15 : vector<1x1xf32> to vector<1x8xf32>
    %17 = arith.subf %13, %16 : vector<1x8xf32>
    %18 = math.exp %17 : vector<1x8xf32>
    %cst_13 = arith.constant dense<0.000000e+00> : vector<1xf32>
    %19 = vector.multi_reduction <add>, %18, %cst_13 [1] : vector<1x8xf32> to vector<1xf32>
    %20 = vector.shape_cast %19 : vector<1xf32> to vector<1x1xf32>
    %21 = vector.broadcast %20 : vector<1x1xf32> to vector<1x8xf32>
    %22 = arith.divf %18, %21 : vector<1x8xf32>
    %c0_14 = arith.constant 0 : index
    %c0_15 = arith.constant 0 : index
    %c0_16 = arith.constant 0 : index
    %23 = vector.load %arg17[%c0_14, %c0_15, %c0_16] : memref<1x1x8xf32, #tpu.memory_space<vmem>>, vector<1x1x8xf32>
    %24 = vector.shape_cast %23 : vector<1x1x8xf32> to vector<1x8xf32>
    %25 = vector.shape_cast %22 : vector<1x8xf32> to vector<1x1x8xf32>
    tpu.vector_store %arg17[%c0_14, %c0_15, %c0_16], %25 {strides = array<i32>} : memref<1x1x8xf32, #tpu.memory_space<vmem>>, vector<1x1x8xf32>,
    %26 = arith.truncf %22 : vector<1x8xf32> to vector<1x8xbf16>
    %c0_17 = arith.constant 0 : index
    %c0_18 = arith.constant 0 : index
    %27 = vector.load %arg3[%c0_17, %c0_18] : memref<8x32xbf16, #tpu.memory_space<vmem>>, vector<8x32xbf16>
    %cst_19 = arith.constant dense<0.000000e+00> : vector<1x32xf32>
    %28 = tpu.matmul %26, %27, %cst_19 {dimension_numbers = #tpu.dot_dimension_numbers<[1], [0], [0], [1], [0, 0, 1, 1], [], []>} : vector<1x8xbf16>, vector<8x32xbf16>, vector<1x32xf32> -> vector<1x32xf32>
    %c0_20 = arith.constant 0 : index
    %c0_21 = arith.constant 0 : index
    %c0_22 = arith.constant 0 : index
    %29 = vector.load %arg9[%c0_20, %c0_21, %c0_22] : memref<2x32x96xbf16, #tpu.memory_space<vmem>>, vector<1x32x96xbf16>
    %30 = vector.shape_cast %29 : vector<1x32x96xbf16> to vector<32x96xbf16>
    %cst_23 = arith.constant dense<0.000000e+00> : vector<1x96xf32>
    %31 = tpu.matmul %5, %30, %cst_23 {dimension_numbers = #tpu.dot_dimension_numbers<[1], [0], [0], [1], [0, 0, 1, 1], [], []>} : vector<1x32xbf16>, vector<32x96xbf16>, vector<1x96xf32> -> vector<1x96xf32>
    %32 = arith.truncf %28 : vector<1x32xf32> to vector<1x32xbf16>
    %c1 = arith.constant 1 : index
    %c0_24 = arith.constant 0 : index
    %c0_25 = arith.constant 0 : index
    %33 = vector.load %arg9[%c1, %c0_24, %c0_25] : memref<2x32x96xbf16, #tpu.memory_space<vmem>>, vector<1x32x96xbf16>
    %34 = vector.shape_cast %33 : vector<1x32x96xbf16> to vector<32x96xbf16>
    %cst_26 = arith.constant dense<0.000000e+00> : vector<1x96xf32>
    %35 = tpu.matmul %32, %34, %cst_26 {dimension_numbers = #tpu.dot_dimension_numbers<[1], [0], [0], [1], [0, 0, 1, 1], [], []>} : vector<1x32xbf16>, vector<32x96xbf16>, vector<1x96xf32> -> vector<1x96xf32>
    %36 = arith.addf %31, %35 : vector<1x96xf32>
    %c0_27 = arith.constant 0 : index
    %c0_28 = arith.constant 0 : index
    %37 = vector.load %arg10[%c0_27, %c0_28] : memref<1x96xf32, #tpu.memory_space<vmem>>, vector<1x96xf32>
    %38 = arith.addf %36, %37 : vector<1x96xf32>
    %39 = arith.truncf %3 : vector<1x32xf32> to vector<1x32xbf16>
    %c0_29 = arith.constant 0 : index
    %c0_30 = arith.constant 0 : index
    %40 = vector.load %arg11[%c0_29, %c0_30] : memref<32x96xbf16, #tpu.memory_space<vmem>>, vector<32x96xbf16>
    %cst_31 = arith.constant dense<0.000000e+00> : vector<1x96xf32>
    %41 = tpu.matmul %39, %40, %cst_31 {dimension_numbers = #tpu.dot_dimension_numbers<[1], [0], [0], [1], [0, 0, 1, 1], [], []>} : vector<1x32xbf16>, vector<32x96xbf16>, vector<1x96xf32> -> vector<1x96xf32>
    %c0_32 = arith.constant 0 : index
    %c0_33 = arith.constant 0 : index
    %42 = vector.load %arg12[%c0_32, %c0_33] : memref<1x96xf32, #tpu.memory_space<vmem>>, vector<1x96xf32>
    %43 = arith.addf %41, %42 : vector<1x96xf32>
    %44 = vector.extract_strided_slice %38 {offsets = [0, 0], sizes = [1, 32], strides = [1, 1]} : vector<1x96xf32> to vector<1x32xf32>
    %45 = vector.extract_strided_slice %43 {offsets = [0, 0], sizes = [1, 32], strides = [1, 1]} : vector<1x96xf32> to vector<1x32xf32>
    %46 = arith.addf %44, %45 : vector<1x32xf32>
    %47 = arith.negf %46 : vector<1x32xf32>
    %48 = math.exp %47 : vector<1x32xf32>
    %cst_34 = arith.constant 1.000000e+00 : f32
    %49 = vector.broadcast %cst_34 : f32 to vector<1x32xf32>
    %50 = arith.addf %49, %48 : vector<1x32xf32>
    %51 = arith.divf %49, %50 : vector<1x32xf32>
    %52 = vector.extract_strided_slice %38 {offsets = [0, 32], sizes = [1, 32], strides = [1, 1]} : vector<1x96xf32> to vector<1x32xf32>
    %53 = vector.extract_strided_slice %43 {offsets = [0, 32], sizes = [1, 32], strides = [1, 1]} : vector<1x96xf32> to vector<1x32xf32>
    %54 = arith.addf %52, %53 : vector<1x32xf32>
    %55 = arith.negf %54 : vector<1x32xf32>
    %56 = math.exp %55 : vector<1x32xf32>
    %cst_35 = arith.constant 1.000000e+00 : f32
    %57 = vector.broadcast %cst_35 : f32 to vector<1x32xf32>
    %58 = arith.addf %57, %56 : vector<1x32xf32>
    %59 = arith.divf %57, %58 : vector<1x32xf32>
    %60 = vector.extract_strided_slice %38 {offsets = [0, 64], sizes = [1, 32], strides = [1, 1]} : vector<1x96xf32> to vector<1x32xf32>
    %61 = vector.extract_strided_slice %43 {offsets = [0, 64], sizes = [1, 32], strides = [1, 1]} : vector<1x96xf32> to vector<1x32xf32>
    %62 = arith.mulf %51, %61 : vector<1x32xf32>
    %63 = arith.addf %60, %62 : vector<1x32xf32>
    %64 = math.tanh %63 : vector<1x32xf32>
    %cst_36 = arith.constant 1.000000e+00 : f32
    %65 = vector.broadcast %cst_36 : f32 to vector<1x32xf32>
    %66 = arith.subf %65, %59 : vector<1x32xf32>
    %67 = arith.mulf %66, %64 : vector<1x32xf32>
    %68 = arith.mulf %59, %3 : vector<1x32xf32>
    %69 = arith.addf %67, %68 : vector<1x32xf32>
    %c0_37 = arith.constant 0 : index
    %c0_38 = arith.constant 0 : index
    %70 = vector.load %arg18[%c0_37, %c0_38] : memref<1x32xf32, #tpu.memory_space<vmem>>, vector<1x32xf32>
    tpu.vector_store %arg18[%c0_37, %c0_38], %69 {strides = array<i32>} : memref<1x32xf32, #tpu.memory_space<vmem>>, vector<1x32xf32>,
    %c0_39 = arith.constant 0 : index
    %c0_40 = arith.constant 0 : index
    %71 = vector.load %arg16[%c0_39, %c0_40] : memref<1x32xf32, #tpu.memory_space<vmem>>, vector<1x32xf32>
    tpu.vector_store %arg16[%c0_39, %c0_40], %69 {strides = array<i32>} : memref<1x32xf32, #tpu.memory_space<vmem>>, vector<1x32xf32>,
    %72 = arith.truncf %69 : vector<1x32xf32> to vector<1x32xbf16>
    %c0_41 = arith.constant 0 : index
    %c0_42 = arith.constant 0 : index
    %c0_43 = arith.constant 0 : index
    %73 = vector.load %arg13[%c0_41, %c0_42, %c0_43] : memref<2x32x16xbf16, #tpu.memory_space<vmem>>, vector<1x32x16xbf16>
    %74 = vector.shape_cast %73 : vector<1x32x16xbf16> to vector<32x16xbf16>
    %cst_44 = arith.constant dense<0.000000e+00> : vector<1x16xf32>
    %75 = tpu.matmul %72, %74, %cst_44 {dimension_numbers = #tpu.dot_dimension_numbers<[1], [0], [0], [1], [0, 0, 1, 1], [], []>} : vector<1x32xbf16>, vector<32x16xbf16>, vector<1x16xf32> -> vector<1x16xf32>
    %76 = arith.truncf %28 : vector<1x32xf32> to vector<1x32xbf16>
    %c1_45 = arith.constant 1 : index
    %c0_46 = arith.constant 0 : index
    %c0_47 = arith.constant 0 : index
    %77 = vector.load %arg13[%c1_45, %c0_46, %c0_47] : memref<2x32x16xbf16, #tpu.memory_space<vmem>>, vector<1x32x16xbf16>
    %78 = vector.shape_cast %77 : vector<1x32x16xbf16> to vector<32x16xbf16>
    %cst_48 = arith.constant dense<0.000000e+00> : vector<1x16xf32>
    %79 = tpu.matmul %76, %78, %cst_48 {dimension_numbers = #tpu.dot_dimension_numbers<[1], [0], [0], [1], [0, 0, 1, 1], [], []>} : vector<1x32xbf16>, vector<32x16xbf16>, vector<1x16xf32> -> vector<1x16xf32>
    %80 = arith.addf %75, %79 : vector<1x16xf32>
    %c0_49 = arith.constant 0 : index
    %c0_50 = arith.constant 0 : index
    %81 = vector.load %arg14[%c0_49, %c0_50] : memref<1x16xf32, #tpu.memory_space<vmem>>, vector<1x16xf32>
    %82 = arith.addf %80, %81 : vector<1x16xf32>
    %cst_51 = arith.constant dense<0xFF800000> : vector<1xf32>
    %83 = vector.multi_reduction <maximumf>, %82, %cst_51 [1] : vector<1x16xf32> to vector<1xf32>
    %84 = vector.shape_cast %83 : vector<1xf32> to vector<1x1xf32>
    %85 = vector.broadcast %84 : vector<1x1xf32> to vector<1x16xf32>
    %86 = arith.subf %82, %85 : vector<1x16xf32>
    %87 = math.exp %86 : vector<1x16xf32>
    %cst_52 = arith.constant dense<0.000000e+00> : vector<1xf32>
    %88 = vector.multi_reduction <add>, %87, %cst_52 [1] : vector<1x16xf32> to vector<1xf32>
    %89 = vector.shape_cast %88 : vector<1xf32> to vector<1x1xf32>
    %90 = math.log %89 : vector<1x1xf32>
    %91 = arith.addf %84, %90 : vector<1x1xf32>
    %92 = vector.broadcast %91 : vector<1x1xf32> to vector<1x16xf32>
    %93 = arith.subf %82, %92 : vector<1x16xf32>
    %c0_53 = arith.constant 0 : index
    %c0_54 = arith.constant 0 : index
    %c0_55 = arith.constant 0 : index
    %94 = vector.load %arg15[%c0_53, %c0_54, %c0_55] : memref<1x1x16xf32, #tpu.memory_space<vmem>>, vector<1x1x16xf32>
    %95 = vector.shape_cast %94 : vector<1x1x16xf32> to vector<1x16xf32>
    %96 = vector.shape_cast %93 : vector<1x16xf32> to vector<1x1x16xf32>
    tpu.vector_store %arg15[%c0_53, %c0_54, %c0_55], %96 {strides = array<i32>} : memref<1x1x16xf32, #tpu.memory_space<vmem>>, vector<1x1x16xf32>,
    return
  }
  func.func @transform_0(%arg0: i32, %arg1: memref<1xi32, #tpu.memory_space<smem>>) -> (i32, i32, i32) {
    %0 = arith.index_cast %arg0 : i32 to index
    %1 = memref.load %arg1[%0] : memref<1xi32, #tpu.memory_space<smem>>
    %c0_i32 = arith.constant 0 : i32
    %c0_i32_0 = arith.constant 0 : i32
    %c0_i32_1 = arith.constant 0 : i32
    return %1, %c0_i32, %c0_i32_0 : i32, i32, i32
  }
  func.func @transform_1(%arg0: i32, %arg1: memref<1xi32, #tpu.memory_space<smem>>) -> (i32, i32) {
    %c0_i32 = arith.constant 0 : i32
    %c0_i32_0 = arith.constant 0 : i32
    %c0_i32_1 = arith.constant 0 : i32
    return %c0_i32, %c0_i32_0 : i32, i32
  }
  func.func @transform_2(%arg0: i32, %arg1: memref<1xi32, #tpu.memory_space<smem>>) -> (i32, i32) {
    %c0_i32 = arith.constant 0 : i32
    %c0_i32_0 = arith.constant 0 : i32
    %c0_i32_1 = arith.constant 0 : i32
    return %c0_i32, %c0_i32_0 : i32, i32
  }
  func.func @transform_3(%arg0: i32, %arg1: memref<1xi32, #tpu.memory_space<smem>>) -> (i32, i32) {
    %c0_i32 = arith.constant 0 : i32
    %c0_i32_0 = arith.constant 0 : i32
    %c0_i32_1 = arith.constant 0 : i32
    return %c0_i32, %c0_i32_0 : i32, i32
  }
  func.func @transform_4(%arg0: i32, %arg1: memref<1xi32, #tpu.memory_space<smem>>) -> (i32, i32) {
    %c0_i32 = arith.constant 0 : i32
    %c0_i32_0 = arith.constant 0 : i32
    %c0_i32_1 = arith.constant 0 : i32
    return %c0_i32, %c0_i32_0 : i32, i32
  }
  func.func @transform_5(%arg0: i32, %arg1: memref<1xi32, #tpu.memory_space<smem>>) -> (i32, i32) {
    %c0_i32 = arith.constant 0 : i32
    %c0_i32_0 = arith.constant 0 : i32
    %c0_i32_1 = arith.constant 0 : i32
    return %c0_i32, %c0_i32_0 : i32, i32
  }
  func.func @transform_6(%arg0: i32, %arg1: memref<1xi32, #tpu.memory_space<smem>>) -> (i32, i32) {
    %c0_i32 = arith.constant 0 : i32
    %c0_i32_0 = arith.constant 0 : i32
    %c0_i32_1 = arith.constant 0 : i32
    return %c0_i32, %c0_i32_0 : i32, i32
  }
  func.func @transform_7(%arg0: i32, %arg1: memref<1xi32, #tpu.memory_space<smem>>) -> (i32, i32, i32) {
    %c0_i32 = arith.constant 0 : i32
    %c0_i32_0 = arith.constant 0 : i32
    %c0_i32_1 = arith.constant 0 : i32
    %c0_i32_2 = arith.constant 0 : i32
    return %c0_i32, %c0_i32_0, %c0_i32_1 : i32, i32, i32
  }
  func.func @transform_8(%arg0: i32, %arg1: memref<1xi32, #tpu.memory_space<smem>>) -> (i32, i32) {
    %c0_i32 = arith.constant 0 : i32
    %c0_i32_0 = arith.constant 0 : i32
    %c0_i32_1 = arith.constant 0 : i32
    return %c0_i32, %c0_i32_0 : i32, i32
  }
  func.func @transform_9(%arg0: i32, %arg1: memref<1xi32, #tpu.memory_space<smem>>) -> (i32, i32) {
    %c0_i32 = arith.constant 0 : i32
    %c0_i32_0 = arith.constant 0 : i32
    %c0_i32_1 = arith.constant 0 : i32
    return %c0_i32, %c0_i32_0 : i32, i32
  }
  func.func @transform_10(%arg0: i32, %arg1: memref<1xi32, #tpu.memory_space<smem>>) -> (i32, i32) {
    %c0_i32 = arith.constant 0 : i32
    %c0_i32_0 = arith.constant 0 : i32
    %c0_i32_1 = arith.constant 0 : i32
    return %c0_i32, %c0_i32_0 : i32, i32
  }
  func.func @transform_11(%arg0: i32, %arg1: memref<1xi32, #tpu.memory_space<smem>>) -> (i32, i32, i32) {
    %c0_i32 = arith.constant 0 : i32
    %c0_i32_0 = arith.constant 0 : i32
    %c0_i32_1 = arith.constant 0 : i32
    %c0_i32_2 = arith.constant 0 : i32
    return %c0_i32, %c0_i32_0, %c0_i32_1 : i32, i32, i32
  }
  func.func @transform_12(%arg0: i32, %arg1: memref<1xi32, #tpu.memory_space<smem>>) -> (i32, i32) {
    %c0_i32 = arith.constant 0 : i32
    %c0_i32_0 = arith.constant 0 : i32
    %c0_i32_1 = arith.constant 0 : i32
    return %c0_i32, %c0_i32_0 : i32, i32
  }
  func.func @transform_13(%arg0: i32, %arg1: memref<1xi32, #tpu.memory_space<smem>>) -> (i32, i32, i32) {
    %c0_i32 = arith.constant 0 : i32
    %c0_i32_0 = arith.constant 0 : i32
    %c0_i32_1 = arith.constant 0 : i32
    return %arg0, %c0_i32, %c0_i32_0 : i32, i32, i32
  }
  func.func @transform_14(%arg0: i32, %arg1: memref<1xi32, #tpu.memory_space<smem>>) -> (i32, i32) {
    %c0_i32 = arith.constant 0 : i32
    %c0_i32_0 = arith.constant 0 : i32
    %c0_i32_1 = arith.constant 0 : i32
    return %c0_i32, %c0_i32_0 : i32, i32
  }
  func.func @transform_15(%arg0: i32, %arg1: memref<1xi32, #tpu.memory_space<smem>>) -> (i32, i32, i32) {
    %c0_i32 = arith.constant 0 : i32
    %c0_i32_0 = arith.constant 0 : i32
    %c0_i32_1 = arith.constant 0 : i32
    return %arg0, %c0_i32, %c0_i32_0 : i32, i32, i32
  }
}

</mosaic_0001>

<bundles_post_ra>
// kernel: bahdanau_attn_decoder.1
= control target key start
LH: loop header
LB: loop body
LE: loop exit
PB: predicated region body
PF: predicated region fallthrough
CT: control target
= control target key end

     0   :  { %s1257_s0 = inlined_call_operand.<no memory space> [shape: s32[1], index: 0, kind: input, shape index: {}]   ;;  %s1258_s1 = inlined_call_operand.vmem [shape: bf16[16,1,32], index: 1, kind: input, shape index: {}]   ;;  %s1259_s2 = inlined_call_operand.vmem [shape: bf16[8,32], index: 2, kind: input, shape index: {}]   ;;  %s1260_s3 = inlined_call_operand.vmem [shape: f32[1,32], index: 3, kind: input, shape index: {}]   ;;  %s1261_s4 = inlined_call_operand.vmem [shape: bf16[32,32], index: 4, kind: input, shape index: {}]   ;;  %s1262_s5 = inlined_call_operand.vmem [shape: bf16[32,32], index: 5, kind: input, shape index: {}]   ;;  %s1263_s6 = inlined_call_operand.vmem [shape: f32[1,32], index: 6, kind: input, shape index: {}]   ;;  %s1264_s7 = inlined_call_operand.vmem [shape: f32[1,32], index: 7, kind: input, shape index: {}]   ;;  %s1265_s8 = inlined_call_operand.vmem [shape: bf16[2,32,96], index: 8, kind: input, shape index: {}]   ;;  %s1266_s9 = inlined_call_operand.vmem [shape: f32[1,96], index: 9, kind: input, shape index: {}]   ;;  %s1267_s10 = inlined_call_operand.vmem [shape: bf16[32,96], index: 10, kind: input, shape index: {}]   ;;  %s1268_s11 = inlined_call_operand.vmem [shape: f32[1,96], index: 11, kind: input, shape index: {}]   ;;  %s1269_s12 = inlined_call_operand.vmem [shape: bf16[2,32,16], index: 12, kind: input, shape index: {}]   ;;  %s1270_s13 = inlined_call_operand.vmem [shape: f32[1,16], index: 13, kind: input, shape index: {}]   ;;  %s1271_s14 = inlined_call_operand.hbm [shape: f32[1,1,16], index: 14, kind: output, shape index: {0}]   ;;  %s1272_s15 = inlined_call_operand.hbm [shape: f32[1,32], index: 15, kind: output, shape index: {1}]   ;;  %s1273_s16 = inlined_call_operand.hbm [shape: f32[1,1,8], index: 16, kind: output, shape index: {2}]  }
   0x1   :  { %1275 = sst [smem:[#allocation13_spill]] %s1257_s0 }
   0x2   :  { %23 = vsyncpa [#allocation7], 0  ;;  %v886_v0 = vld [vmem:[%s1262_s5] sm:$0xff]   ;;  %v984_v1 = vmov 0.0   ;;  %v887_v2 = vld [vmem:[%s1262_s5 + $0x8] sm:$0xff]   ;;  %vm985_vm0 = vmmov 0  }
   0x3   :  { %811 = vmatprep.subr.bf16.mxu0 %v984_v1  ;;  %819 = vmatprep.subr.bf16.mxu1 %v984_v1  ;;  %v888_v3 = vld [vmem:[%s1261_s4] sm:$0xff]   ;;  %vm97_vm1 = vcmask 261120   ;;  %v889_v5 = vld [vmem:[%s1261_s4 + $0x8] sm:$0xff]   ;;  %vm71_vm2 = vcmask 253952  }
   0x4   :  { %812 = vmatpush3.bf16.msra.mxu0 %v886_v0  ;;  %815 = vmatprep.mubr.msk.bf16.mxu0 %vm985_vm0, %v984_v1  ;;  %v73_v4 = vld [vmem:[%s1259_s2] sm:$0xf] }
   0x5   :  { %813 = vmatprep.subr.bf16.mxu0 %v984_v1  ;;  %823 = vmatprep.mubr.msk.bf16.mxu1 %vm985_vm0, %v984_v1  ;;  %v70_v6 = vld [vmem:[%s1260_s3] sm:$0x1] }
   0x6   :  { %820 = vmatpush3.bf16.msra.mxu1 %v888_v3  ;;  %72 = vst.msk [vmem:[#allocation2] sm:$0x1] %vm71_vm2, %v70_v6 }
   0x7   :  { %821 = vmatprep.subr.bf16.mxu1 %v984_v1 }
   0x8   :  { %814 = vmatpush3.bf16.msra.mxu0 %v887_v2 }
   0x9   :  { %838 = vmatprep.subr.bf16.mxu0 %v984_v1 }
   0xa   :  { %822 = vmatpush3.bf16.msra.mxu1 %v889_v5 }
   0xb   :  { %816 = vmatmul.mubr.msk.bf16.vlgmr.msra.gmra.mrb[0].mxu0 %vm97_vm1, %v73_v4  ;;  %827 = vmatprep.subr.mxu1 %v984_v1 }
   0xc   :  { %842 = vmatprep.mubr.msk.bf16.mxu0 %vm985_vm0, %v984_v1 }
   0xd   :  { %24 = vsyncpa [#allocation9], 0  ;;  %v1109_v7 = vld [vmem:[#allocation2] sm:$0x1]  ;;  %v206_v9 = vlaneseq  ;;  %vm288_vm3 = vcmask 57344   ;;  %vm307_vm4 = vcmask 1043456  }
   0xe   :  { %v1113_v8 = vpack.c.bf16 %v1109_v7, %v1109_v7  ;;  %v752_v10 = vld [vmem:[%s1263_s6] ss:$0 sm:$0xff]  ;;  %v892_v36 = vld [vmem:[%s1265_s8 + $0x10] sm:$0xff]   ;;  %s1276_s23 = sld [smem:[#allocation13_spill]]  ;;  %vm303_vm5 = vcmask 64512   ;;  %v891_v42 = vld [vmem:[%s1265_s8 + $0x8] sm:$0xff]  }
   0xf   :  { %v1122_v11 = vshrl.u32 %v206_v9, 7  ;;  %v211_v25 = vld [vmem:[%s1264_s7] sm:$0x1]  ;;  %839 = vmatpush3.bf16.msra.mxu0 %v892_v36  ;;  %v893_v44 = vld [vmem:[%s1269_s12 + $0x10] sm:$0xff]   ;;  %v894_v45 = vld [vmem:[%s1265_s8 + $0x18] sm:$0xff]   ;;  %s986_s21 = smov 64  }
  0x10   :  { %824 = vmatmul.mubr.msk.bf16.vlgmr.msra.gmra.mrb[0].mxu1 %vm97_vm1, %v1113_v8  ;;  %v302_v34 = vld [vmem:[%s1259_s2] sm:$0xf]  ;;  %840 = vmatprep.subr.bf16.mxu0 %v984_v1  ;;  %v895_v46 = vld [vmem:[%s1269_s12 + $0x18] sm:$0xff]   ;;  %v897_v53 = vld [vmem:[%s1267_s10 + $0x8] sm:$0xff]   ;;  %s988_s26 = smov 96   ;;  %vm693_vm6 = vcmask 122880  }
  0x11   :  { %829 = vmatprep.mubr.msk.f32.mxu1 %vm985_vm0, %v984_v1  ;;  %v208_v17 = vsub.s32 0, %v1122_v11  ;;  %v309_v35 = vsel %vm307_vm4, %v302_v34, 0  ;;  %v890_v40 = vld [vmem:[%s1265_s8] sm:$0xff]  }
  0x12   :  { %v896_v48 = vld [vmem:[%s1267_s10] sm:$0xff]  }
  0x13   :  { %841 = vmatpush3.bf16.msra.mxu0 %v894_v45  ;;  %v477_v4 = vld [vmem:[%s1268_s11] sm:$0x1]  ;;  %s987_s11 = smov 32  }
  0x14   :  { %p61_p0 = scmp.lt.s32.totalorder %s1276_s23, 15  ;;  %854 = vmatprep.subr.bf16.mxu0 %v984_v1 }
  0x16   :  { %s1278_s23 = smov (!%p61_p0, %s1276_s23), 15 }
  0x17   :  { %s63_s30 = scalar_lea.vmem %s1258_s1, %s1278_s23 }
  0x18   :  { %v143_v43 = vld [vmem:[%s63_s30] sm:$0x1] }
  0xde   :  { %v135_v12 = vpop.f32.mrb[0].mxu0 }
  0xdf   :  { %v136_v13 = vadd.f32 %v752_v10, %v135_v12  ;;  %v817_v14 = vpop.f32.mrb[1].mxu0  ;;  %v471_v12 = vld [vmem:[%s1266_s9] sm:$0x1] }
  0xe0   :  { %v138_v15 = vpop.f32.mrb[2].mxu0 }
  0xe1   :  { %141 = vst.msk [vmem:[#allocation3] sm:$0xff] %vm97_vm1, %v136_v13  ;;  %v818_v16 = vpop.f32.mrb[3].mxu0 }
  0xe3   :  { %v199_v18 = vpop.f32.mrb[0].mxu1 }
  0xe4   :  { %v209_v19 = vrot.slane %v199_v18, %v208_v17  ;;  %v825_v20 = vpop.f32.mrb[1].mxu1 }
  0xe5   :  { %v202_v21 = vpop.f32.mrb[2].mxu1 }
  0xe6   :  { %v826_v22 = vpop.f32.mrb[3].mxu1 }
  0xe7   :  { %v558_v22 = vrot.slane %v1109_v7, %v208_v17 }
  0xe8   :  { %v205_v23 = vld [vmem:[#allocation3] sm:$0xff] }
  0xe9   :  { %v210_v24 = vadd.f32 %v209_v19, %v205_v23 }
  0xeb   :  { %828 = vmatpush3.xpose.msk.msra.mxu1 %vm97_vm1, %v210_v24 }
  0xec   :  { %832 = vmatprep.subr.bf16.mxu1 %v984_v1 }
  0xee   :  { %830 = vmatmul.mubr.msk.f32.vlgmr.msra.gmra.mrb[4].mxu1 %vm97_vm1, %v211_v25  ;;  %v898_v25 = vld [vmem:[%s1269_s12] sm:$0xff]  }
  0xef   :  { %834 = vmatprep.mubr.msk.bf16.mxu1 %vm985_vm0, %v984_v1  ;;  %833 = vmatpush3.bf16.msra.mxu1 %v309_v35 }
  0xf0   :  { %846 = vmatprep.subr.bf16.mxu1 %v984_v1 }
 0x1c1   :  { %v284_v26 = vpop.f32.mrb[4].mxu1 }
 0x1c2   :  { %v289_v27 = vsel %vm288_vm3, %v284_v26, -inf  ;;  %v831_v28 = vpop.f32.mrb[5].mxu1 }
 0x1c3   :  { %290 = vmax.xlane.f32.xlu0 %v289_v27 }
 0x250   :  { %v291_v29 = vpop.xlane.xlu0 %290 }
 0x251   :  { %v292_v30 = vsub.f32 %v284_v26, %v291_v29  ;;  %v899_v26 = vld [vmem:[%s1269_s12 + $0x8] sm:$0xff]  }
 0x253   :  { %v293_v31 = vmul.f32 1.442695, %v292_v30 }
 0x255   :  { %900 = vpow2.f32 %v293_v31 }
 0x25f   :  { %v901_v32 = vpop.eup %900 }
 0x260   :  { %v295_v33 = vsel %vm288_vm3, %v901_v32, 0.0 }
 0x261   :  { %296 = vadd.xlane.f32.xlu0 %v295_v33 }
 0x2ee   :  { %v297_v37 = vpop.xlane.xlu0 %296 }
 0x2ef   :  { %902 = vrcp.f32 %v297_v37 }
 0x2f9   :  { %v903_v38 = vpop.eup %902 }
 0x2fa   :  { %v299_v39 = vmul.f32 %v903_v38, %v901_v32 }
 0x2fc   :  { %300 = vst.msk [vmem:[#allocation10] sm:$0x1] %vm288_vm3, %v299_v39  ;;  %v301_v41 = vpack.c.bf16 %v299_v39, %v299_v39 }
 0x2fe   :  { %835 = vmatmul.mubr.msk.bf16.vlgmr.msra.gmra.mrb[8].mxu1 %vm303_vm5, %v301_v41 }
 0x2ff   :  { %847 = vmatpush3.bf16.msra.mxu1 %v890_v40  ;;  %850 = vmatprep.mubr.msk.bf16.mxu1 %vm985_vm0, %v984_v1 }
 0x300   :  { %848 = vmatprep.subr.bf16.mxu1 %v984_v1 }
 0x303   :  { %849 = vmatpush3.bf16.msra.mxu1 %v891_v42 }
 0x304   :  { %862 = vmatprep.subr.bf16.mxu1 %v984_v1 }
 0x306   :  { %851 = vmatmul.mubr.msk.bf16.vlgmr.msra.gmra.mrb[12].mxu1 %vm97_vm1, %v143_v43 }
 0x307   :  { %863 = vmatpush3.bf16.msra.mxu1 %v893_v44  ;;  %866 = vmatprep.mubr.msk.bf16.mxu1 %vm985_vm0, %v984_v1 }
 0x308   :  { %864 = vmatprep.subr.bf16.mxu1 %v984_v1 }
 0x30b   :  { %865 = vmatpush3.bf16.msra.mxu1 %v895_v46 }
 0x3d1   :  { %v345_v47 = vpop.f32.mrb[8].mxu1 }
 0x3d2   :  { %v355_v49 = vpack.c.bf16 %v345_v47, %v345_v47  ;;  %v836_v50 = vpop.f32.mrb[9].mxu1 }
 0x3d3   :  { %v348_v51 = vpop.f32.mrb[10].mxu1 }
 0x3d4   :  { %v837_v52 = vpop.f32.mrb[11].mxu1  ;;  %843 = vmatmul.mubr.msk.bf16.vlgmr.msra.gmra.mrb[4].mxu0 %vm97_vm1, %v355_v49  ;;  %867 = vmatmul.mubr.msk.bf16.vlgmr.msra.gmra.mrb[16].mxu1 %vm97_vm1, %v355_v49 }
 0x3d5   :  { %855 = vmatpush3.bf16.msra.mxu0 %v896_v48  ;;  %858 = vmatprep.mubr.msk.bf16.mxu0 %vm985_vm0, %v984_v1 }
 0x3d6   :  { %856 = vmatprep.subr.bf16.mxu0 %v984_v1 }
 0x3d9   :  { %857 = vmatpush3.bf16.msra.mxu0 %v897_v53  ;;  %v465_v54 = vpop.f32.mrb[12].mxu1 }
 0x3da   :  { %v852_v55 = vpop.f32.mrb[13].mxu1  ;;  %870 = vmatprep.subr.bf16.mxu0 %v984_v1 }
 0x3db   :  { %v468_v56 = vpop.f32.mrb[14].mxu1 }
 0x3dc   :  { %859 = vmatmul.mubr.msk.bf16.vlgmr.msra.gmra.mrb[8].mxu0 %vm97_vm1, %v1113_v8  ;;  %v853_v57 = vpop.f32.mrb[15].mxu1 }
 0x3dd   :  { %874 = vmatprep.mubr.msk.bf16.mxu0 %vm985_vm0, %v984_v1  ;;  %871 = vmatpush3.bf16.msra.mxu0 %v898_v25 }
 0x3de   :  { %872 = vmatprep.subr.bf16.mxu0 %v984_v1  ;;  %v691_v1 = vld [vmem:[%s1270_s13] sm:$0x1]  ;;  %s989_s13 = smov [#allocation8]  }
 0x3df   :  { %s724_s5 = sshll.u32 %s989_s13, 4  ;;  %s725_s5 = int_to_ptr.vmem [resolvable:$true] %s724_s5 }
 0x3e0   :  { %s914_s28 = scalar_lea.vmem %s725_s5, 16  ;;  %s918_s29 = scalar_lea.vmem %s725_s5, 32 }
 0x3e1   :  { %873 = vmatpush3.bf16.msra.mxu0 %v899_v26  ;;  %p915_p1 = scmp.ne.s32.totalorder %s725_s5, %s914_s28  ;;  %p919_p2 = scmp.lt.s32.totalorder %s725_s5, %s725_s5 }
 0x3e2   :  { %p920_p3 = scmp.lt.s32.totalorder %s918_s29, %s914_s28 }
 0x3e4   :  { %p921_p4 = por %p920_p3, %p919_p2 }
 0x3e6   :  { %p922_p5 = pnand %p921_p4, %p915_p1 }
 0x4a7   :  { %v410_v58 = vpop.f32.mrb[4].mxu0  ;;  %v627_v59 = vpop.f32.mrb[16].mxu1 }
 0x4a8   :  { %v466_v60 = vadd.f32 %v465_v54, %v410_v58  ;;  %v844_v61 = vpop.f32.mrb[5].mxu0  ;;  %v868_v62 = vpop.f32.mrb[17].mxu1 }
 0x4a9   :  { %v413_v63 = vpop.f32.mrb[6].mxu0  ;;  %v630_v0 = vpop.f32.mrb[18].mxu1 }
 0x4aa   :  { %v845_v2 = vpop.f32.mrb[7].mxu0  ;;  %v869_v3 = vpop.f32.mrb[19].mxu1  ;;  %v472_v13 = vadd.f32 %v471_v12, %v466_v60 }
 0x4af   :  { %v524_v5 = vpop.f32.mrb[8].mxu0 }
 0x4b0   :  { %v525_v6 = vadd.f32 %v524_v5, %v477_v4  ;;  %v860_v8 = vpop.f32.mrb[9].mxu0 }
 0x4b1   :  { %v527_v9 = vpop.f32.mrb[10].mxu0 }
 0x4b2   :  { %538 = vrot.lane.b32.xlu1 %v525_v6, %s986_s21  ;;  %v861_v10 = vpop.f32.mrb[11].mxu0  ;;  %v530_v14 = vadd.f32 %v525_v6, %v472_v13 }
 0x4b4   :  { %v775_v15 = vmul.f32 -1.442695, %v530_v14 }
 0x4b6   :  { %904 = vpow2.f32 %v775_v15 }
 0x4c0   :  { %v905_v16 = vpop.eup %904 }
 0x4c1   :  { %v534_v18 = vadd.f32 1.0, %v905_v16 }
 0x4c3   :  { %906 = vrcp.f32 %v534_v18 }
 0x4cd   :  { %v907_v19 = vpop.eup %906 }
 0x4ce   :  { %v548_v11 = vsub.f32 1.0, %v907_v19 }
 0x524   :  { %v539_v20 = vpop.permute.xlu1 %538 }
 0x525   :  { %v541_v21 = vmul.f32 %v907_v19, %v539_v20 }
 0x527   :  { %543 = vrot.lane.b32.xlu1 %v541_v21, %s986_s21 }
 0x52b   :  { %559 = vrot.lane.b32.xlu1 %v558_v22, %s987_s11 }
 0x599   :  { %v544_v23 = vpop.permute.xlu1 %543 }
 0x59a   :  { %v546_v24 = vadd.f32 %v544_v23, %v472_v13 }
 0x59c   :  { %908 = vtanh.f32 %v546_v24 }
 0x59d   :  { %v560_v7 = vpop.permute.xlu1 %559 }
 0x59e   :  { %v562_v28 = vmul.f32 %v907_v19, %v560_v7 }
 0x5a6   :  { %v909_v27 = vpop.eup %908 }
 0x5a7   :  { %550 = vrot.lane.b32.xlu0 %v909_v27, %s988_s26 }
 0x619   :  { %v551_v17 = vpop.permute.xlu0 %550 }
 0x61a   :  { %v553_v29 = vmul.f32 %v551_v17, %v548_v11 }
 0x61c   :  { %v563_v30 = vadd.f32 %v562_v28, %v553_v29 }
 0x61e   :  { %v571_v31 = vpack.c.bf16 %v563_v30, %v563_v30 }
 0x620   :  { %634 = vrot.lane.b32.xlu1 %v571_v31, %s988_s26 }
 0x692   :  { %v635_v32 = vpop.permute.xlu1 %634 }
 0x693   :  { %875 = vmatmul.mubr.msk.bf16.vlgmr.msra.gmra.mrb[12].mxu0 %vm97_vm1, %v635_v32 }
 0x766   :  { %v685_v33 = vpop.f32.mrb[12].mxu0 }
 0x767   :  { %v686_v34 = vadd.f32 %v685_v33, %v627_v59  ;;  %v876_v35 = vpop.f32.mrb[13].mxu0 }
 0x768   :  { %v688_v36 = vpop.f32.mrb[14].mxu0 }
 0x769   :  { %v692_v37 = vadd.f32 %v691_v1, %v686_v34  ;;  %v877_v38 = vpop.f32.mrb[15].mxu0 }
 0x76b   :  { %v694_v39 = vsel %vm693_vm6, %v692_v37, -inf }
 0x76c   :  { %695 = vmax.xlane.f32.xlu1 %v694_v39 }
 0x77d   :  { %565 = vrot.lane.b32.xlu1 %v563_v30, %s988_s26 }
 0x7f9   :  { %v696_v40 = vpop.xlane.xlu1 %695 }
 0x7fa   :  { %v697_v41 = vsub.f32 %v692_v37, %v696_v40 }
 0x7fc   :  { %v698_v42 = vmul.f32 1.442695, %v697_v41 }
 0x7fd   :  { %v566_v43 = vpop.permute.xlu1 %565 }
 0x7fe   :  { %910 = vpow2.f32 %v698_v42  ;;  %569 = vst.msk [vmem:[#allocation2] sm:$0x1] %vm71_vm2, %v566_v43  ;;  %570 = vst.msk [vmem:[#allocation8] sm:$0x1] %vm71_vm2, %v566_v43 }
 0x808   :  { %v911_v44 = vpop.eup %910 }
 0x809   :  { %v700_v45 = vsel %vm693_vm6, %v911_v44, 0.0 }
 0x80a   :  { %701 = vadd.xlane.f32.xlu0 %v700_v45 }
 0x80b   :  { %925 = shalt.err (!%p922_p5)
}
 0x80c   :  { %s926_s3 = scalar_lea.hbm %s1272_s15, 16 }
 0x80d   :  { %p927_p6 = scmp.ne.s32.totalorder %s1272_s15, %s926_s3  ;;  %p930_p7 = scmp.lt.u32.totalorder %s926_s3, %s1272_s15 }
 0x80f   :  { %p932_p8 = pnand %p930_p7, %p927_p6 }
 0x811   :  { %935 = shalt.err (!%p932_p8)
}
 0x812   :  { %727 = dma.vmem_to_hbm [thread:$0]  %s725_s5, 16, %s1272_s15, [#allocation9]  }
 0x813   :  { %s990_s8 = smov [#allocation10]  }
 0x814   :  { %s734_s19 = sshll.u32 %s990_s8, 4  ;;  %s735_s19 = int_to_ptr.vmem [resolvable:$true] %s734_s19 }
 0x815   :  { %s936_s10 = scalar_lea.vmem %s735_s19, 16  ;;  %s940_s20 = scalar_lea.vmem %s735_s19, 32 }
 0x816   :  { %p937_p9 = scmp.ne.s32.totalorder %s735_s19, %s936_s10  ;;  %p941_p10 = scmp.lt.s32.totalorder %s735_s19, %s735_s19 }
 0x817   :  { %p942_p11 = scmp.lt.s32.totalorder %s940_s20, %s936_s10 }
 0x819   :  { %p943_p12 = por %p942_p11, %p941_p10 }
 0x81b   :  { %p944_p13 = pnand %p943_p12, %p937_p9 }
 0x81d   :  { %947 = shalt.err (!%p944_p13)
}
 0x81e   :  { %s948_s23 = scalar_lea.hbm %s1273_s16, 16 }
 0x81f   :  { %p949_p0 = scmp.ne.s32.totalorder %s1273_s16, %s948_s23  ;;  %p952_p1 = scmp.lt.u32.totalorder %s948_s23, %s1273_s16 }
 0x821   :  { %p954_p2 = pnand %p952_p1, %p949_p0 }
 0x823   :  { %957 = shalt.err (!%p954_p2)
}
 0x824   :  { %737 = dma.vmem_to_hbm [thread:$0]  %s735_s19, 16, %s1273_s16, [#allocation9]  }
 0x825   :  { %s991_s26 = smov [#allocation6]  }
 0x826   :  { %s714_s27 = sshll.u32 %s991_s26, 4  ;;  %s715_s27 = int_to_ptr.vmem [resolvable:$true] %s714_s27 }
 0x827   :  { %s958_s12 = scalar_lea.vmem %s715_s27, 16  ;;  %s962_s13 = scalar_lea.vmem %s715_s27, 32 }
 0x828   :  { %p959_p3 = scmp.ne.s32.totalorder %s715_s27, %s958_s12  ;;  %p963_p4 = scmp.lt.s32.totalorder %s715_s27, %s715_s27 }
 0x829   :  { %p964_p5 = scmp.lt.s32.totalorder %s962_s13, %s958_s12 }
 0x82b   :  { %p965_p6 = por %p964_p5, %p963_p4 }
 0x82d   :  { %p966_p7 = pnand %p965_p6, %p959_p3 }
 0x897   :  { %v702_v46 = vpop.xlane.xlu0 %701 }
 0x898   :  { %912 = vlog2.f32 %v702_v46 }
 0x8a2   :  { %v913_v47 = vpop.eup %912 }
 0x8a3   :  { %v704_v48 = vmul.f32 0.6931472, %v913_v47 }
 0x8a5   :  { %v705_v49 = vadd.f32 %v704_v48, %v696_v40 }
 0x8a7   :  { %v706_v50 = vsub.f32 %v692_v37, %v705_v49 }
 0x8a9   :  { %707 = vst.msk [vmem:[#allocation6] sm:$0x1] %vm693_vm6, %v706_v50 }
 0x8aa   :  { %969 = shalt.err (!%p966_p7)
}
 0x8ab   :  { %s970_s28 = scalar_lea.hbm %s1271_s14, 16 }
 0x8ac   :  { %p971_p8 = scmp.ne.s32.totalorder %s1271_s14, %s970_s28  ;;  %p974_p9 = scmp.lt.u32.totalorder %s970_s28, %s1271_s14 }
 0x8ae   :  { %p976_p10 = pnand %p974_p9, %p971_p8 }
 0x8b0   :  { %979 = shalt.err (!%p976_p10)
}
 0x8b1   :  { %717 = dma.vmem_to_hbm [thread:$0]  %s715_s27, 16, %s1271_s14, [#allocation7]  }
 0x8b2   :  { %980 = dma.done.wait [#allocation7], 16  }
 0x8b3   :  { %981 = vsyncadd [#allocation7], 4294967280 }
 0x8b4   :  { %982 = dma.done.wait [#allocation9], 32  }
 0x8b5   :  { %983 = vsyncadd [#allocation9], 4294967264 }
 0x8b6   :  { %747 = vsyncpa [#allocation7], 1 }
 0x8b7   :  { %748 = vsyncpa [#allocation9], 1 }

</bundles_post_ra>
